<compile_context>
chip_gen: v6e
topology: v6e:2x2x1
jax: 0.10.0
libtpu: 0.0.40
codegen_flags: <defaults>
</compile_context>

<pallas_src>
import math
import functools

import jax
import jax.numpy as jnp
from jax import lax
from jax.experimental import pallas as pl
from jax.experimental.pallas import tpu as pltpu


# ----------------------------------------------------------------------------
# Kernel A: fused QKV projection:  qkv = x @ [Wq|Wk|Wv]^T + [bq|bk|bv]
# ----------------------------------------------------------------------------
def _qkv_proj_kernel(x_ref, w_ref, b_ref, q_ref, k_ref, v_ref, *, hidden):
    x = x_ref[0]                                                 # (TS, H)
    qkv = jnp.dot(x, w_ref[...], preferred_element_type=jnp.float32)
    qkv = qkv + b_ref[...]                                       # (TS, 3H)
    q_ref[0] = qkv[:, 0 * hidden:1 * hidden].astype(q_ref.dtype)
    k_ref[0] = qkv[:, 1 * hidden:2 * hidden].astype(k_ref.dtype)
    v_ref[0] = qkv[:, 2 * hidden:3 * hidden].astype(v_ref.dtype)


# ----------------------------------------------------------------------------
# Kernel B: flash-style causal attention (all heads batched) + output proj
# ----------------------------------------------------------------------------
def _flash_attn_kernel(q_ref, k_ref, v_ref, wp_ref, bp_ref, o_ref,
                       m_sc, l_sc, acc_sc, qh_sc,
                       *, n_heads, head_dim, q_tile, kv_tile):
    qi = pl.program_id(1)
    ki = pl.program_id(2)
    scale = 1.0 / math.sqrt(head_dim)

    # New query tile: reset online-softmax state and cache the (scaled) Q heads
    # so the head-split relayout happens once per q-tile, not once per KV step.
    @pl.when(ki == 0)
    def _():
        m_sc[...] = jnp.full_like(m_sc, -jnp.inf)
        l_sc[...] = jnp.zeros_like(l_sc)
        acc_sc[...] = jnp.zeros_like(acc_sc)
        q = q_ref[0]                                             # (TQ, H)
        qh = jnp.transpose(q.reshape(q_tile, n_heads, head_dim), (1, 0, 2))
        qh_sc[...] = qh * scale                                  # (nh, TQ, hd)

    # Causal tile skip: KV tiles strictly above the diagonal contribute exactly
    # zero (exp(-10000 - m) underflows), so do no work for them at all.
    @pl.when(ki <= qi)
    def _():
        kh = jnp.transpose(k_ref[0].reshape(kv_tile, n_heads, head_dim), (1, 0, 2))
        vh = jnp.transpose(v_ref[0].reshape(kv_tile, n_heads, head_dim), (1, 0, 2))

        # (nh, TQ, hd) x (nh, TKV, hd) -> (nh, TQ, TKV), all heads in one pass.
        s = jnp.einsum("hqd,hkd->hqk", qh_sc[...], kh,
                       preferred_element_type=jnp.float32)

        # Per-tile causal mask from program_id offsets (no full (S,S) iota).
        row = lax.broadcasted_iota(jnp.int32, (q_tile, kv_tile), 0) + qi * q_tile
        col = lax.broadcasted_iota(jnp.int32, (q_tile, kv_tile), 1) + ki * kv_tile
        causal = (col <= row)[None, :, :]
        s = jnp.where(causal, s, -10000.0)          # same bias as the reference

        # Online softmax update (f32 accumulators in VMEM scratch).
        m_new = jnp.maximum(m_sc[...], jnp.max(s, axis=-1, keepdims=True))
        alpha = jnp.exp(m_sc[...] - m_new)
        p = jnp.exp(s - m_new)
        l_sc[...] = alpha * l_sc[...] + jnp.sum(p, axis=-1, keepdims=True)
        acc_sc[...] = alpha * acc_sc[...] + jnp.einsum(
            "hqk,hkd->hqd", p, vh, preferred_element_type=jnp.float32)
        m_sc[...] = m_new

    # Last KV step: normalize (EUP reciprocal), merge heads, output projection.
    @pl.when(ki == pl.num_programs(2) - 1)
    def _():
        inv_l = pl.reciprocal(l_sc[...], approx=True)            # (nh, TQ, 1)
        heads = acc_sc[...] * inv_l                              # (nh, TQ, hd)
        merged = jnp.transpose(heads, (1, 0, 2)).reshape(q_tile, n_heads * head_dim)
        y = jnp.dot(merged, wp_ref[...], preferred_element_type=jnp.float32)
        y = y + bp_ref[...]
        o_ref[0] = y.astype(o_ref.dtype)


# ----------------------------------------------------------------------------
# Wrapper
# ----------------------------------------------------------------------------
def generative_attention(x, params, *, n_heads, seq_tile=128):
    """x: (B, S, H) float32.  params: wq,bq,wk,bk,wv,bv,wp,bp (PyTorch layout)."""
    B, S, H = x.shape
    if H % n_heads != 0:
        raise ValueError(f"hidden must be a multiple of n_heads, got {H}/{n_heads}")
    head_dim = H // n_heads

    tile = seq_tile if (S % seq_tile == 0 and seq_tile <= S) else S
    num_tiles = S // tile

    # Pre-transpose + fuse weights on the host side: y = x @ W.T + b -> x @ Wt + b.
    w_qkv_t = jnp.concatenate(
        [params["wq"].T, params["wk"].T, params["wv"].T], axis=1)   # (H, 3H)
    b_qkv = jnp.concatenate(
        [params["bq"], params["bk"], params["bv"]]).reshape(1, 3 * H)
    wp_t = params["wp"].T                                           # (H, H)
    bp = params["bp"].reshape(1, H)

    # ---- Kernel A: fused QKV projection ------------------------------------
    seq_spec = pl.BlockSpec((1, tile, H), lambda b, s: (b, s, 0))
    qkv_kernel = functools.partial(_qkv_proj_kernel, hidden=H)
    q, k, v = pl.pallas_call(
        qkv_kernel,
        out_shape=(jax.ShapeDtypeStruct((B, S, H), jnp.float32),) * 3,
        grid_spec=pltpu.PrefetchScalarGridSpec(
            num_scalar_prefetch=0,
            grid=(B, num_tiles),
            in_specs=[
                seq_spec,
                pl.BlockSpec((H, 3 * H), lambda b, s: (0, 0)),
                pl.BlockSpec((1, 3 * H), lambda b, s: (0, 0)),
            ],
            out_specs=(seq_spec, seq_spec, seq_spec),
        ),
        compiler_params=pltpu.CompilerParams(
            dimension_semantics=("parallel", "parallel")),
    )(x, w_qkv_t, b_qkv)

    # ---- Kernel B: flash attention + fused output projection ---------------
    attn_kernel = functools.partial(
        _flash_attn_kernel, n_heads=n_heads, head_dim=head_dim,
        q_tile=tile, kv_tile=tile)

    q_spec = pl.BlockSpec((1, tile, H), lambda b, qi, ki: (b, qi, 0))
    # Clamp the KV block index at the causal diagonal: skipped tiles re-use the
    # previous block index, so Pallas does not issue a DMA for them.
    kv_spec = pl.BlockSpec((1, tile, H),
                           lambda b, qi, ki: (b, jnp.minimum(ki, qi), 0))

    out = pl.pallas_call(
        attn_kernel,
        out_shape=jax.ShapeDtypeStruct((B, S, H), x.dtype),
        grid_spec=pltpu.PrefetchScalarGridSpec(
            num_scalar_prefetch=0,
            grid=(B, num_tiles, num_tiles),
            in_specs=[
                q_spec,
                kv_spec,
                kv_spec,
                pl.BlockSpec((H, H), lambda b, qi, ki: (0, 0)),
                pl.BlockSpec((1, H), lambda b, qi, ki: (0, 0)),
            ],
            out_specs=q_spec,
            scratch_shapes=[
                pltpu.VMEM((n_heads, tile, 1), jnp.float32),        # m
                pltpu.VMEM((n_heads, tile, 1), jnp.float32),        # l
                pltpu.VMEM((n_heads, tile, head_dim), jnp.float32), # acc
                pltpu.VMEM((n_heads, tile, head_dim), jnp.float32), # scaled q heads
            ],
        ),
        compiler_params=pltpu.CompilerParams(
            dimension_semantics=("parallel", "parallel", "arbitrary")),
    )(q, k, v, wp_t, bp)
    return out


# ----------------------------------------------------------------------------
# Pure-JAX reference mirroring the PyTorch forward (eval mode)
# ----------------------------------------------------------------------------
def reference_attention(x, params, *, n_heads):
    B, S, H = x.shape
    hd = H // n_heads

    def lin(t, w, b):
        return t @ w.T + b

    q = lin(x, params["wq"], params["bq"]).reshape(B, S, n_heads, hd).transpose(0, 2, 1, 3)
    k = lin(x, params["wk"], params["bk"]).reshape(B, S, n_heads, hd).transpose(0, 2, 1, 3)
    v = lin(x, params["wv"], params["bv"]).reshape(B, S, n_heads, hd).transpose(0, 2, 1, 3)

    scores = jnp.einsum("bhqd,bhkd->bhqk", q, k) / math.sqrt(hd)
    mask = jnp.tril(jnp.ones((S, S), dtype=bool))[None, None]
    scores = jnp.where(mask, scores, jnp.float32(-10000.0))
    p = jax.nn.softmax(scores, axis=-1)
    out = jnp.einsum("bhqk,bhkd->bhqd", p, v)
    out = out.transpose(0, 2, 1, 3).reshape(B, S, H)
    return lin(out, params["wp"], params["bp"])


if __name__ == "__main__":
    # Module defaults: hidden_size=128, n_heads=4 (head_dim=32).  Small test:
    # batch=2, seq=128, tiled with seq_tile=64 so the (B, 2, 2) flash grid and
    # causal tile-skipping are actually exercised.
    B, S, H, NH = 2, 128, 128, 4
    key = jax.random.PRNGKey(0)
    kx, kq, kk, kv, kp, kb = jax.random.split(key, 6)
    kbq, kbk, kbv, kbp = jax.random.split(kb, 4)

    x = jax.random.normal(kx, (B, S, H), dtype=jnp.float32)

    # Weights ~ N(0, 0.02) as in init_weights(); small nonzero biases so the
    # bias path is actually tested.
    params = {
        "wq": 0.02 * jax.random.normal(kq, (H, H), dtype=jnp.float32),
        "bq": 0.01 * jax.random.normal(kbq, (H,), dtype=jnp.float32),
        "wk": 0.02 * jax.random.normal(kk, (H, H), dtype=jnp.float32),
        "bk": 0.01 * jax.random.normal(kbk, (H,), dtype=jnp.float32),
        "wv": 0.02 * jax.random.normal(kv, (H, H), dtype=jnp.float32),
        "bv": 0.01 * jax.random.normal(kbv, (H,), dtype=jnp.float32),
        "wp": 0.02 * jax.random.normal(kp, (H, H), dtype=jnp.float32),
        "bp": 0.01 * jax.random.normal(kbp, (H,), dtype=jnp.float32),
    }

    out = generative_attention(x, params, n_heads=NH, seq_tile=64)
    out = jax.block_until_ready(out)

    ref = reference_attention(x, params, n_heads=NH)
    assert out.shape == (B, S, H)
    max_err = float(jnp.max(jnp.abs(out - ref)))
    assert jnp.allclose(out, ref, atol=5e-4, rtol=5e-3), f"mismatch vs reference: {max_err}"

    print("KERNEL_OK")
</pallas_src>

<mosaic_0001>
module attributes {stable_mosaic.version = 11 : i64} {
  func.func @_qkv_proj_kernel(%arg0: i32, %arg1: i32, %arg2: memref<1x64x128xf32, #tpu.memory_space<vmem>>, %arg3: memref<128x384xf32, #tpu.memory_space<vmem>>, %arg4: memref<1x384xf32, #tpu.memory_space<vmem>>, %arg5: memref<1x64x128xf32, #tpu.memory_space<vmem>>, %arg6: memref<1x64x128xf32, #tpu.memory_space<vmem>>, %arg7: memref<1x64x128xf32, #tpu.memory_space<vmem>>) attributes {dimension_semantics = [#tpu.dimension_semantics<parallel>, #tpu.dimension_semantics<parallel>], iteration_bounds = array<i64: 2, 2>, scalar_prefetch = 0 : i64, scratch_operands = 0 : i64, tpu.core_type = #tpu.core_type<tc>, window_params = [{transform_indices = @transform_0, window_bounds = array<i64: 1, 64, 128>}, {pipeline_mode = #tpu.pipeline_mode<synchronous>, transform_indices = @transform_1, window_bounds = array<i64: 128, 384>}, {pipeline_mode = #tpu.pipeline_mode<synchronous>, transform_indices = @transform_2, window_bounds = array<i64: 1, 384>}, {transform_indices = @transform_3, window_bounds = array<i64: 1, 64, 128>}, {transform_indices = @transform_4, window_bounds = array<i64: 1, 64, 128>}, {transform_indices = @transform_5, window_bounds = array<i64: 1, 64, 128>}]} {
    %c0 = arith.constant 0 : index
    %c0_0 = arith.constant 0 : index
    %c0_1 = arith.constant 0 : index
    %0 = vector.load %arg2[%c0, %c0_0, %c0_1] : memref<1x64x128xf32, #tpu.memory_space<vmem>>, vector<1x64x128xf32>
    %1 = vector.shape_cast %0 : vector<1x64x128xf32> to vector<64x128xf32>
    %c0_2 = arith.constant 0 : index
    %c0_3 = arith.constant 0 : index
    %2 = vector.load %arg3[%c0_2, %c0_3] : memref<128x384xf32, #tpu.memory_space<vmem>>, vector<128x384xf32>
    %cst = arith.constant dense<0.000000e+00> : vector<64x384xf32>
    %3 = tpu.matmul %1, %2, %cst {dimension_numbers = #tpu.dot_dimension_numbers<[1], [0], [0], [1], [0, 0, 1, 1], [], []>} : vector<64x128xf32>, vector<128x384xf32>, vector<64x384xf32> -> vector<64x384xf32>
    %c0_4 = arith.constant 0 : index
    %c0_5 = arith.constant 0 : index
    %4 = vector.load %arg4[%c0_4, %c0_5] : memref<1x384xf32, #tpu.memory_space<vmem>>, vector<1x384xf32>
    %5 = vector.broadcast %4 : vector<1x384xf32> to vector<64x384xf32>
    %6 = arith.addf %3, %5 : vector<64x384xf32>
    %7 = vector.extract_strided_slice %6 {offsets = [0, 0], sizes = [64, 128], strides = [1, 1]} : vector<64x384xf32> to vector<64x128xf32>
    %c0_6 = arith.constant 0 : index
    %c0_7 = arith.constant 0 : index
    %c0_8 = arith.constant 0 : index
    %8 = vector.load %arg5[%c0_6, %c0_7, %c0_8] : memref<1x64x128xf32, #tpu.memory_space<vmem>>, vector<1x64x128xf32>
    %9 = vector.shape_cast %8 : vector<1x64x128xf32> to vector<64x128xf32>
    %10 = vector.shape_cast %7 : vector<64x128xf32> to vector<1x64x128xf32>
    tpu.vector_store %arg5[%c0_6, %c0_7, %c0_8], %10 {strides = array<i32>} : memref<1x64x128xf32, #tpu.memory_space<vmem>>, vector<1x64x128xf32>,
    %11 = vector.extract_strided_slice %6 {offsets = [0, 128], sizes = [64, 128], strides = [1, 1]} : vector<64x384xf32> to vector<64x128xf32>
    %c0_9 = arith.constant 0 : index
    %c0_10 = arith.constant 0 : index
    %c0_11 = arith.constant 0 : index
    %12 = vector.load %arg6[%c0_9, %c0_10, %c0_11] : memref<1x64x128xf32, #tpu.memory_space<vmem>>, vector<1x64x128xf32>
    %13 = vector.shape_cast %12 : vector<1x64x128xf32> to vector<64x128xf32>
    %14 = vector.shape_cast %11 : vector<64x128xf32> to vector<1x64x128xf32>
    tpu.vector_store %arg6[%c0_9, %c0_10, %c0_11], %14 {strides = array<i32>} : memref<1x64x128xf32, #tpu.memory_space<vmem>>, vector<1x64x128xf32>,
    %15 = vector.extract_strided_slice %6 {offsets = [0, 256], sizes = [64, 128], strides = [1, 1]} : vector<64x384xf32> to vector<64x128xf32>
    %c0_12 = arith.constant 0 : index
    %c0_13 = arith.constant 0 : index
    %c0_14 = arith.constant 0 : index
    %16 = vector.load %arg7[%c0_12, %c0_13, %c0_14] : memref<1x64x128xf32, #tpu.memory_space<vmem>>, vector<1x64x128xf32>
    %17 = vector.shape_cast %16 : vector<1x64x128xf32> to vector<64x128xf32>
    %18 = vector.shape_cast %15 : vector<64x128xf32> to vector<1x64x128xf32>
    tpu.vector_store %arg7[%c0_12, %c0_13, %c0_14], %18 {strides = array<i32>} : memref<1x64x128xf32, #tpu.memory_space<vmem>>, vector<1x64x128xf32>,
    return
  }
  func.func @transform_0(%arg0: i32, %arg1: i32) -> (i32, i32, i32) {
    %c0_i32 = arith.constant 0 : i32
    %c0_i32_0 = arith.constant 0 : i32
    return %arg0, %arg1, %c0_i32 : i32, i32, i32
  }
  func.func @transform_1(%arg0: i32, %arg1: i32) -> (i32, i32) {
    %c0_i32 = arith.constant 0 : i32
    %c0_i32_0 = arith.constant 0 : i32
    %c0_i32_1 = arith.constant 0 : i32
    return %c0_i32, %c0_i32_0 : i32, i32
  }
  func.func @transform_2(%arg0: i32, %arg1: i32) -> (i32, i32) {
    %c0_i32 = arith.constant 0 : i32
    %c0_i32_0 = arith.constant 0 : i32
    %c0_i32_1 = arith.constant 0 : i32
    return %c0_i32, %c0_i32_0 : i32, i32
  }
  func.func @transform_3(%arg0: i32, %arg1: i32) -> (i32, i32, i32) {
    %c0_i32 = arith.constant 0 : i32
    %c0_i32_0 = arith.constant 0 : i32
    return %arg0, %arg1, %c0_i32 : i32, i32, i32
  }
  func.func @transform_4(%arg0: i32, %arg1: i32) -> (i32, i32, i32) {
    %c0_i32 = arith.constant 0 : i32
    %c0_i32_0 = arith.constant 0 : i32
    return %arg0, %arg1, %c0_i32 : i32, i32, i32
  }
  func.func @transform_5(%arg0: i32, %arg1: i32) -> (i32, i32, i32) {
    %c0_i32 = arith.constant 0 : i32
    %c0_i32_0 = arith.constant 0 : i32
    return %arg0, %arg1, %c0_i32 : i32, i32, i32
  }
}

</mosaic_0001>

<bundles_post_ra>
// kernel: tpu_custom_call.1
= control target key start
LH: loop header
LB: loop body
LE: loop exit
PB: predicated region body
PF: predicated region fallthrough
CT: control target
= control target key end

     0   :  { %s1650_s0 = inlined_call_operand.hbm [shape: f32[2,128,128], index: 0, kind: input, shape index: {}]   ;;  %s1651_s1 = inlined_call_operand.hbm [shape: f32[128,384], index: 1, kind: input, shape index: {}]   ;;  %s1652_s2 = inlined_call_operand.vmem [shape: f32[1,384], index: 2, kind: input, shape index: {}]   ;;  %s1653_s3 = inlined_call_operand.hbm [shape: f32[2,128,128], index: 3, kind: output, shape index: {0}]   ;;  %s1654_s4 = inlined_call_operand.hbm [shape: f32[2,128,128], index: 4, kind: output, shape index: {1}]   ;;  %s1655_s5 = inlined_call_operand.hbm [shape: f32[2,128,128], index: 5, kind: output, shape index: {2}]  }
   0x1   :  { %1663 = sst [smem:[#allocation19_spill]] %s1651_s1 }
   0x2   :  { %1664 = sst [smem:[#allocation20_spill]] %s1654_s4 }
   0x3   :  { %1665 = sst [smem:[#allocation21_spill]] %s1655_s5 }
   0x4   :  { %11 = vsyncpa [#allocation3], 0 }
   0x5   :  { %13 = vsyncpa [#allocation3 + $0x1], 0 }
   0x6   :  { %14 = vsyncpa [#allocation6], 0 }
   0x7   :  { %15 = vsyncpa [#allocation4], 0 }
   0x8   :  { %17 = vsyncpa [#allocation4 + $0x1], 0 }
   0x9   :  { %18 = vsyncpa [#allocation9], 0 }
   0xa   :  { %20 = vsyncpa [#allocation9 + $0x1], 0  ;;  %s1303_s18 = smov 0   ;;  %s1305_s19 = smov 0  }
   0xb   :  { %s1307_s20 = smov 0   ;;  %s1309_s21 = smov 0  }
   0xc   :  { %s1311_s22 = smov 0   ;;  %s1313_s23 = smov 0  }
   0xd   :  { %s1315_s24 = smov 0   ;;  %s1317_s25 = smov 0  }
   0xe LB: > { %1666 = sst [smem:[#allocation15_spill]] %s1231_s18  ;;  %s1344_s26 = sadd.s32 4294967295, %s1259_s25   ;;  %s1259_s25 = sphi %s1317_s25, %s26_s25   ;;  %s1255_s24 = sphi %s1315_s24, %s1691_s24   ;;  %s1251_s23 = sphi %s1313_s23, %s1686_s23   ;;  %s1247_s22 = sphi %s1311_s22, %s1690_s22   ;;  %s1243_s21 = sphi %s1309_s21, %s1685_s21   ;;  %s1239_s20 = sphi %s1307_s20, %s1689_s20   ;;  %s1235_s19 = sphi %s1305_s19, %s1688_s19   ;;  %s1231_s18 = sphi %s1303_s18, %s1687_s18  }
   0xf   : > { %1667 = sst [smem:[#allocation16_spill]] %s1251_s23  ;;  %s1656_s27 = sadd.s32 4294967294, %s1259_s25  }
  0x10   : > { %p60_p0 = scmp.ne.s32.totalorder %s1235_s19, %s1231_s18  ;;  %p61_p1 = scmp.eq.s32.totalorder %s1344_s26, 0 }
  0x11   : > { %p134_p3 = scmp.eq.s32.totalorder %s1656_s27, 3  ;;  %p848_p5 = scmp.ge.s32.totalorder %s1259_s25, 1 }
  0x12   : > { %p1355_p4 = por %p61_p1, %p60_p0  ;;  %p197_p7 = scmp.lt.s32.totalorder %s1259_s25, 5 }
  0x13   : > { %p1360_p6 = por %p134_p3, %p60_p0  ;;  %s1261_s6 = smov [#allocation5]  }
  0x14   : > { %p1365_p8 = pnand %p848_p5, %p197_p7  ;;  %s209_s7 = sshll.u32 %s1261_s6, 4  ;;  %s210_s7 = int_to_ptr.vmem [resolvable:$true] %s209_s7 }
  0x15   : > { %s1669_s29 = scalar_select %p1360_p6, 1, 0 }
  0x16   : > { %p955_p9 = pneg %p1365_p8  ;;  %s1060_s8 = scalar_lea.vmem %s210_s7, 6144 }
  0x17   : > { %1670 = sst [smem:[#allocation17_spill]] %s1669_s29  ;;  %p1061_p12 = scmp.ne.s32.totalorder %s210_s7, %s1060_s8 }
  0x18   : > { %p956_p10 = pnand %p955_p9, %p61_p1  ;;  %p1068_p3 = scmp.lt.s32.totalorder %s210_s7, %s210_s7 }
  0x19   : > { %p1069_p2 = scmp.lt.s32.totalorder %s1060_s8, %s1060_s8 }
  0x1a   : > { %p1051_p11 = pneg %p956_p10 }
  0x1b   : > { %p1070_p6 = por %p1069_p2, %p1068_p3 }
  0x1c   : > { %p1063_p13 = pnand %p1061_p12, %p1051_p11 }
  0x1e   : > { %p1064_p0 = pneg %p1063_p13 }
  0x20   : > { %p1071_p5 = pnand %p1070_p6, %p1064_p0 }
  0x22   : > { %1074 = shalt.err (!%p1071_p5)
}
  0x23   : > { %s1262_s9 = smov 384   ;;  %s1263_s10 = smov 24  }
  0x24   : > { %s1672_s1 = sld [smem:[#allocation19_spill]]  ;;  %s35_s13 = sadd.s32 1, %s1251_s23 }
  0x25   : > { %p36_p2 = scmp.ge.s32.totalorder %s35_s13, 2  ;;  %s38_s14 = sadd.s32 1, %s1255_s24 }
  0x26   : > { %s47_s15 = sadd.s32 1, %s1239_s20  ;;  %p54_p6 = scmp.ne.s32.totalorder %s1239_s20, %s1235_s19 }
  0x27   : > { %s1693_s13 = smov (%p36_p2, %s35_s13), 0  ;;  %s1695_s14 = smov (!%p36_p2, %s38_s14), %s1255_s24 }
  0x28   : > { %1673 = sst [smem:[#allocation18_spill]] %s1693_s13  ;;  %s43_s16 = ssub.s32 %s1251_s23, %s1693_s13 }
  0x29   : > { %p55_p7 = scmp.eq.s32.totalorder %s1259_s25, 0  ;;  %p40_p9 = scmp.ge.s32.totalorder %s1695_s14, 2 }
  0x2a   : > { %958 = dma.hbm_to_vmem [thread:$0]  (!%p956_p10), %s1672_s1, 6144, %s210_s7, [#allocation6], %s1262_s9, %s1262_s9, %s1263_s10  }
  0x2b   : > { %p1674_p11 = scmp.eq.s32.totalorder %s1344_s26, 3  ;;  %p1393_p10 = por %p55_p7, %p54_p6 }
  0x2c   : > { %p974_p13 = scmp.lt.s32.totalorder %s1259_s25, 4  ;;  %s1697_s14 = smov (%p40_p9, %s1695_s14), 0 }
  0x2d   : > { %p1389_p12 = por %p1674_p11, %p54_p6  ;;  %s226_s7 = sand.u32 1, %s1239_s20  }
  0x2e   : > { %s852_s8 = sshll.u32 %s1251_s23, 3  ;;  %s42_s9 = ssub.s32 %s1255_s24, %s1697_s14 }
  0x2f   : > { %s44_s10 = sor.u32 %s43_s16, %s42_s9  ;;  %s851_s11 = sshll.u32 %s226_s7, 6 }
  0x30   : > { %p45_p0 = scmp.eq.s32.totalorder %s44_s10, 0  ;;  %s853_s12 = sshll.u32 %s1255_s24, 4 }
  0x31   : > { %s230_s27 = scalar_lea.vmem [#allocation2], %s851_s11  ;;  %s236_s29 = sadd.s32 %s853_s12, %s852_s8 }
  0x32   : > { %s239_s1 = sshll.u32 %s230_s27, 4  ;;  %s854_s18 = sshll.u32 %s236_s29, 7  ;;  %s240_s1 = int_to_ptr.vmem [resolvable:$true] %s239_s1 }
  0x33   : > { %s1406_s13 = scalar_select %p45_p0, %s1239_s20, %s47_s15  }
  0x34   : > { %p1412_p3 = pnand %p974_p13, %p1393_p10  ;;  %s238_s16 = scalar_lea.hbm %s1650_s0, %s854_s18 }
  0x35   : > { %s227_s9 = scalar_lea.sflag [#allocation3], %s226_s7  ;;  %s1088_s27 = scalar_lea.vmem %s240_s1, 1024 }
  0x36   : > { %p1077_p5 = pneg %p1412_p3  ;;  %p1089_p2 = scmp.ne.s32.totalorder %s240_s1, %s1088_s27 }
  0x37   : > { %s1264_s15 = smov [#allocation2]  }
  0x38   : > { %p1091_p6 = pnand %p1089_p2, %p1077_p5  ;;  %s1093_s29 = sshll.u32 %s1264_s15, 4  ;;  %s1094_s29 = int_to_ptr.vmem [resolvable:$false] %s1093_s29 }
  0x39   : > { %s1095_s6 = scalar_lea.vmem %s1094_s29, 2048  ;;  %p1096_p9 = scmp.lt.s32.totalorder %s240_s1, %s1094_s29 }
  0x3a   : > { %p1092_p7 = pneg %p1091_p6  ;;  %p1097_p11 = scmp.lt.s32.totalorder %s1095_s6, %s1088_s27 }
  0x3c   : > { %p1098_p10 = por %p1097_p11, %p1096_p9 }
  0x3e   : > { %p1099_p13 = pnand %p1098_p10, %p1092_p7 }
  0x40   : > { %1102 = shalt.err (!%p1099_p13)
}
  0x41   : > { %s1265_s8 = smov 128   ;;  %s1266_s4 = smov 8  }
  0x42   : > { %962 = dma.hbm_to_vmem [thread:$0]  (!%p1412_p3), %s238_s16, 1024, %s240_s1, %s227_s9, %s1265_s8, %s1265_s8, %s1266_s4  }
  0x43   : > { %251 = sbr.rel (%p1365_p8) target bundleno = 396 (0x18c), region = 32  ;;  %s1426_s18 = sand.u32 (!%p1365_p8), 1, %s1235_s19  }
  0x44   : > { %s1429_s23 = sshll.u32 (!%p1365_p8), %s1426_s18, 6  ;;  %s254_s7 = scalar_lea.sflag (!%p1365_p8), [#allocation3], %s1426_s18 }
  0x45   : > { %s1433_s10 = scalar_lea.vmem (!%p1365_p8), [#allocation2], %s1429_s23 }
  0x48   : > { %1214 = dma.done.wait (%p1355_p4), %s254_s7, 1024  }
  0x49   : > { %1216 = vsyncadd (%p1355_p4), %s254_s7, 4294966272 }
  0x4a   : > { %1218 = dma.done.wait (%p61_p1), [#allocation6], 6144  }
  0x4b   : > { %1220 = vsyncadd (%p61_p1), [#allocation6], 4294961152  ;;  %v1267_v0 = vmov 0.0   ;;  %v356_v1 = vld [vmem:[#allocation5 + $0x170] sm:$0xff]  ;;  %v355_v2 = vld [vmem:[#allocation5 + $0x168] sm:$0xff]  ;;  %v360_v57 = vlaneseq  ;;  %s1468_s28 = scalar_lea.vmem [#allocation7], %s1429_s23 }
  0x4c   : > { %439 = vmatprep.mubr.f32.mxu0 %v1267_v0  ;;  %v353_v3 = vld [vmem:[#allocation5 + $0x158] sm:$0xff]  ;;  %375 = vmatprep.subr.mxu0 %v356_v1  ;;  %v352_v4 = vld [vmem:[#allocation5 + $0x150] sm:$0xff]  ;;  %v350_v5 = vld [vmem:[#allocation5 + $0x140] sm:$0xff]  ;;  %s1473_s30 = scalar_lea.vmem [#allocation8], %s1429_s23  ;;  %s1480_s11 = scalar_lea.vmem [#allocation10], %s1429_s23 }
  0x4d   : > { %376 = vmatpush1.msra.mxu0 %v355_v2  ;;  %v349_v6 = vld [vmem:[#allocation5 + $0x138] sm:$0xff]  ;;  %v347_v7 = vld [vmem:[#allocation5 + $0x128] sm:$0xff]  ;;  %v346_v8 = vld [vmem:[#allocation5 + $0x120] sm:$0xff]  ;;  %v361_v58 = vshrl.u32 %v360_v57, 7  ;;  %s864_s12 = sshll.u32 %s1243_s21, 3  ;;  %s865_s16 = sshll.u32 %s1247_s22, 4 }
  0x4e   : > { %377 = vmatprep.subr.mxu0 %v353_v3  ;;  %v357_v9 = vld [vmem:[#allocation5 + $0x178] sm:$0xff]  ;;  %v344_v10 = vld [vmem:[#allocation5 + $0x110] sm:$0xff]  ;;  %v354_v11 = vld [vmem:[#allocation5 + $0x160] sm:$0xff]  ;;  %s643_s9 = sshll.u32 %s1468_s28, 4  ;;  %s661_s27 = sshll.u32 %s1473_s30, 4  ;;  %s1510_s9 = int_to_ptr.vmem [resolvable:$true] %s643_s9  ;;  %s1514_s27 = int_to_ptr.vmem [resolvable:$true] %s661_s27 }
  0x4f   : > { %378 = vmatpush1.msra.mxu0 %v352_v4  ;;  %899 = vmatprep.subr.mxu1 %v357_v9  ;;  %v343_v12 = vld [vmem:[#allocation5 + $0x108] sm:$0xff]  ;;  %v341_v14 = vld [vmem:[#allocation5 + $0xf8] sm:$0xff]  ;;  %v340_v15 = vld [vmem:[#allocation5 + $0xf0] sm:$0xff]  ;;  %v362_v59 = vsub.s32 0, %v361_v58  ;;  %v366_v61 = vsub.s32 1, %v361_v58  ;;  %v370_v63 = vsub.s32 2, %v361_v58  ;;  %s640_s15 = sadd.s32 %s865_s16, %s864_s12 }
  0x50   : > { %379 = vmatprep.subr.mxu0 %v350_v5  ;;  %900 = vmatpush3.msra.mxu1 %v357_v9  ;;  %v351_v13 = vld [vmem:[#allocation5 + $0x148] sm:$0xff]  ;;  %v348_v16 = vld [vmem:[#allocation5 + $0x130] sm:$0xff]  ;;  %v338_v17 = vld [vmem:[#allocation5 + $0xe0] sm:$0xff]  ;;  %s866_s21 = sshll.u32 %s640_s15, 7  ;;  %s679_s22 = sshll.u32 %s1480_s11, 4  ;;  %s1527_s22 = int_to_ptr.vmem [resolvable:$true] %s679_s22 }
  0x51   : > { %380 = vmatpush1.msra.mxu0 %v349_v6  ;;  %901 = vmatprep.subr.mxu1 %v354_v11  ;;  %v337_v18 = vld [vmem:[#allocation5 + $0xd8] sm:$0xff]  ;;  %v335_v20 = vld [vmem:[#allocation5 + $0xc8] sm:$0xff]  ;;  %v334_v21 = vld [vmem:[#allocation5 + $0xc0] sm:$0xff]  ;;  %s1525_s4 = scalar_lea.hbm %s1653_s3, %s866_s21  ;;  %s1679_s12 = sld [smem:[#allocation21_spill]] }
  0x52   : > { %381 = vmatprep.subr.mxu0 %v347_v7  ;;  %902 = vmatpush3.msra.mxu1 %v354_v11  ;;  %v345_v19 = vld [vmem:[#allocation5 + $0x118] sm:$0xff]  ;;  %v342_v22 = vld [vmem:[#allocation5 + $0x100] sm:$0xff]  ;;  %v332_v23 = vld [vmem:[#allocation5 + $0xb0] sm:$0xff]  ;;  %s618_s15 = scalar_lea.sflag [#allocation4], %s1426_s18  ;;  %s1103_s6 = scalar_lea.vmem %s1510_s9, 1024 }
  0x53   : > { %382 = vmatpush1.msra.mxu0 %v346_v8  ;;  %903 = vmatprep.subr.mxu1 %v351_v13  ;;  %v331_v24 = vld [vmem:[#allocation5 + $0xa8] sm:$0xff]  ;;  %v329_v26 = vld [vmem:[#allocation5 + $0x98] sm:$0xff]  ;;  %v328_v27 = vld [vmem:[#allocation5 + $0x90] sm:$0xff]  ;;  %p1104_p1 = scmp.ne.s32.totalorder %s1510_s9, %s1103_s6  ;;  %s1268_s8 = smov [#allocation7]  }
  0x54   : > { %383 = vmatprep.subr.mxu0 %v344_v10  ;;  %904 = vmatpush3.msra.mxu1 %v351_v13  ;;  %v339_v25 = vld [vmem:[#allocation5 + $0xe8] sm:$0xff]  ;;  %v336_v28 = vld [vmem:[#allocation5 + $0xd0] sm:$0xff]  ;;  %v326_v29 = vld [vmem:[#allocation5 + $0x80] sm:$0xff] }
  0x55   : > { %384 = vmatpush1.msra.mxu0 %v343_v12  ;;  %905 = vmatprep.subr.mxu1 %v348_v16  ;;  %v325_v30 = vld [vmem:[#allocation5 + $0x78] sm:$0xff]  ;;  %v323_v32 = vld [vmem:[#allocation5 + $0x68] sm:$0xff]  ;;  %v322_v33 = vld [vmem:[#allocation5 + $0x60] sm:$0xff]  ;;  %p1105_p4 = pnand %p1104_p1, %p1389_p12 }
  0x56   : > { %385 = vmatprep.subr.mxu0 %v341_v14  ;;  %906 = vmatpush3.msra.mxu1 %v348_v16  ;;  %v333_v31 = vld [vmem:[#allocation5 + $0xb8] sm:$0xff]  ;;  %v330_v34 = vld [vmem:[#allocation5 + $0xa0] sm:$0xff]  ;;  %v320_v35 = vld [vmem:[#allocation5 + $0x50] sm:$0xff] }
  0x57   : > { %386 = vmatpush1.msra.mxu0 %v340_v15  ;;  %907 = vmatprep.subr.mxu1 %v345_v19  ;;  %v319_v36 = vld [vmem:[#allocation5 + $0x48] sm:$0xff]  ;;  %v317_v38 = vld [vmem:[#allocation5 + $0x38] sm:$0xff]  ;;  %v316_v39 = vld [vmem:[#allocation5 + $0x30] sm:$0xff]  ;;  %s1539_s16 = scalar_lea.hbm %s1679_s12, %s866_s21  ;;  %p1106_p8 = pneg %p1105_p4 }
  0x58   : > { %387 = vmatprep.subr.mxu0 %v338_v17  ;;  %908 = vmatpush3.msra.mxu1 %v345_v19  ;;  %v327_v37 = vld [vmem:[#allocation5 + $0x88] sm:$0xff]  ;;  %v324_v40 = vld [vmem:[#allocation5 + $0x70] sm:$0xff]  ;;  %v314_v41 = vld [vmem:[#allocation5 + $0x20] sm:$0xff] }
  0x59   : > { %388 = vmatpush1.msra.mxu0 %v337_v18  ;;  %909 = vmatprep.subr.mxu1 %v342_v22  ;;  %v313_v42 = vld [vmem:[#allocation5 + $0x18] sm:$0xff]  ;;  %v311_v44 = vld [vmem:[#allocation5 + $0x8] sm:$0xff]  ;;  %v310_v45 = vld [vmem:[#allocation5] sm:$0xff] }
  0x5a   : > { %389 = vmatprep.subr.mxu0 %v335_v20  ;;  %910 = vmatpush3.msra.mxu1 %v342_v22  ;;  %v321_v43 = vld [vmem:[#allocation5 + $0x58] sm:$0xff]  ;;  %v318_v46 = vld [vmem:[#allocation5 + $0x40] sm:$0xff]  ;;  %v315_v48 = vld [vmem:[#allocation5 + $0x28] sm:$0xff] }
  0x5b   : > { %390 = vmatpush1.msra.mxu0 %v334_v21  ;;  %911 = vmatprep.subr.mxu1 %v339_v25  ;;  %v302_v47 = vld [vmem:[%s1433_s10] sm:$0xff]  ;;  %v312_v49 = vld [vmem:[#allocation5 + $0x10] sm:$0xff]  ;;  %v303_v50 = vld [vmem:[%s1433_s10 + $0x8] sm:$0xff] }
  0x5c   : > { %391 = vmatprep.subr.mxu0 %v332_v23  ;;  %912 = vmatpush3.msra.mxu1 %v339_v25  ;;  %v304_v51 = vld [vmem:[%s1433_s10 + $0x10] sm:$0xff]  ;;  %v305_v52 = vld [vmem:[%s1433_s10 + $0x18] sm:$0xff]  ;;  %v306_v53 = vld [vmem:[%s1433_s10 + $0x20] sm:$0xff] }
  0x5d   : > { %392 = vmatpush1.msra.mxu0 %v331_v24  ;;  %913 = vmatprep.subr.mxu1 %v336_v28  ;;  %v307_v54 = vld [vmem:[%s1433_s10 + $0x28] sm:$0xff]  ;;  %v308_v55 = vld [vmem:[%s1433_s10 + $0x30] sm:$0xff]  ;;  %v309_v56 = vld [vmem:[%s1433_s10 + $0x38] sm:$0xff]  ;;  %s1678_s10 = sld [smem:[#allocation20_spill]] }
  0x5e   : > { %393 = vmatprep.subr.mxu0 %v329_v26  ;;  %914 = vmatpush3.msra.mxu1 %v336_v28  ;;  %v358_v60 = vld [vmem:[%s1652_s2] sm:$0x7] }
  0x5f   : > { %394 = vmatpush1.msra.mxu0 %v328_v27  ;;  %915 = vmatprep.subr.mxu1 %v333_v31  ;;  %v1462_v62 = vrot.slane %v358_v60, %v362_v59  ;;  %v1464_v1 = vrot.slane %v358_v60, %v366_v61 }
  0x60   : > { %395 = vmatprep.subr.mxu0 %v326_v29  ;;  %916 = vmatpush3.msra.mxu1 %v333_v31 }
  0x61   : > { %396 = vmatpush1.msra.mxu0 %v325_v30  ;;  %917 = vmatprep.subr.mxu1 %v330_v34 }
  0x62   : > { %397 = vmatprep.subr.mxu0 %v323_v32  ;;  %918 = vmatpush3.msra.mxu1 %v330_v34 }
  0x63   : > { %398 = vmatpush1.msra.mxu0 %v322_v33  ;;  %919 = vmatprep.subr.mxu1 %v327_v37  ;;  %s1534_s1 = scalar_lea.hbm %s1678_s10, %s866_s21 }
  0x64   : > { %399 = vmatprep.subr.mxu0 %v320_v35  ;;  %920 = vmatpush3.msra.mxu1 %v327_v37 }
  0x65   : > { %400 = vmatpush1.msra.mxu0 %v319_v36  ;;  %921 = vmatprep.subr.mxu1 %v324_v40 }
  0x66   : > { %401 = vmatprep.subr.mxu0 %v317_v38  ;;  %922 = vmatpush3.msra.mxu1 %v324_v40 }
  0x67   : > { %402 = vmatpush1.msra.mxu0 %v316_v39  ;;  %923 = vmatprep.subr.mxu1 %v321_v43 }
  0x68   : > { %403 = vmatprep.subr.mxu0 %v314_v41  ;;  %924 = vmatpush3.msra.mxu1 %v321_v43 }
  0x69   : > { %404 = vmatpush1.msra.mxu0 %v313_v42  ;;  %925 = vmatprep.subr.mxu1 %v318_v46 }
  0x6a   : > { %405 = vmatprep.subr.mxu0 %v311_v44  ;;  %926 = vmatpush3.msra.mxu1 %v318_v46 }
  0x6b   : > { %406 = vmatpush1.msra.mxu0 %v310_v45  ;;  %927 = vmatprep.subr.mxu1 %v315_v48 }
  0x6c   : > { %440 = vmatmul.mubr.f32.vlgmr.msra.gmra.mxu0 %v302_v47  ;;  %928 = vmatpush3.msra.mxu1 %v315_v48 }
  0x6d   : > { %445 = vmatprep.mubr.f32.mxu0 %v1267_v0  ;;  %931 = vmatprep.mubr.f32.mxu1 %v302_v47 }
  0x6e   : > { %929 = vmatprep.subr.mxu1 %v312_v49 }
  0x6f   : > { %930 = vmatpush3.msra.mxu1 %v312_v49 }
  0x70   : > { %446 = vmatmul.mubr.f32.gmra.mxu0 %v303_v50  ;;  %932 = vmatmul.mubr.f32.vlgmr.msra.gmra.mxu1 %v303_v50 }
  0x71   : > { %451 = vmatprep.mubr.f32.mxu0 %v1267_v0  ;;  %934 = vmatprep.mubr.f32.mxu1 %v304_v51 }
  0x74   : > { %452 = vmatmul.mubr.f32.gmra.mxu0 %v304_v51  ;;  %935 = vmatmul.mubr.f32.gmra.mxu1 %v305_v52 }
  0x75   : > { %457 = vmatprep.mubr.f32.mxu0 %v1267_v0  ;;  %937 = vmatprep.mubr.f32.mxu1 %v306_v53 }
  0x78   : > { %458 = vmatmul.mubr.f32.gmra.mxu0 %v305_v52  ;;  %938 = vmatmul.mubr.f32.gmra.mxu1 %v307_v54 }
  0x79   : > { %463 = vmatprep.mubr.f32.mxu0 %v1267_v0  ;;  %940 = vmatprep.mubr.f32.mxu1 %v308_v55 }
  0x7c   : > { %464 = vmatmul.mubr.f32.gmra.mxu0 %v306_v53  ;;  %941 = vmatmul.mubr.f32.gmra.mxu1 %v309_v56 }
  0x7d   : > { %469 = vmatprep.mubr.f32.mxu0 %v1267_v0 }
  0x80   : > { %470 = vmatmul.mubr.f32.gmra.mxu0 %v307_v54 }
  0x81   : > { %475 = vmatprep.mubr.f32.mxu0 %v1267_v0 }
  0x84   : > { %476 = vmatmul.mubr.f32.gmra.mxu0 %v308_v55 }
  0x85   : > { %481 = vmatprep.mubr.f32.mxu0 %v1267_v0  ;;  %v371_v0 = vrot.slane %v358_v60, %v370_v63 }
  0x88   : > { %482 = vmatmul.mubr.f32.gmra.mxu0 %v309_v56 }
 0x12c   : > { %v441_v2 = vpop.f32.mrf.mxu0 }
 0x12d   : > { %v442_v3 = vadd.f32 %v441_v2, %v1462_v62 }
 0x12e   : > { %v443_v4 = vpop.f32.mrf.mxu0 }
 0x12f   : > { %593 = vst [vmem:[%s1468_s28] sm:$0xff] %v442_v3  ;;  %v444_v5 = vadd.f32 %v443_v4, %v1464_v1 }
 0x130   : > { %v447_v6 = vpop.f32.mrf.mxu0  ;;  %v933_v8 = vpop.f32.mrf.mxu1 }
 0x131   : > { %601 = vst [vmem:[%s1473_s30] sm:$0xff] %v444_v5  ;;  %v448_v7 = vadd.f32 %v447_v6, %v1462_v62  ;;  %v560_v10 = vadd.f32 %v933_v8, %v371_v0 }
 0x132   : > { %v449_v9 = vpop.f32.mrf.mxu0  ;;  %v554_v12 = vpop.f32.mrf.mxu1 }
 0x133   : > { %594 = vst [vmem:[%s1468_s28 + $0x8] sm:$0xff] %v448_v7  ;;  %v450_v11 = vadd.f32 %v449_v9, %v1464_v1  ;;  %610 = vst [vmem:[%s1480_s11 + $0x8] sm:$0xff] %v560_v10  ;;  %v555_v14 = vadd.f32 %v554_v12, %v371_v0 }
 0x134   : > { %v453_v13 = vpop.f32.mrf.mxu0  ;;  %v936_v16 = vpop.f32.mrf.mxu1 }
 0x135   : > { %602 = vst [vmem:[%s1473_s30 + $0x8] sm:$0xff] %v450_v11  ;;  %v454_v15 = vadd.f32 %v453_v13, %v1462_v62  ;;  %609 = vst [vmem:[%s1480_s11] sm:$0xff] %v555_v14  ;;  %v570_v18 = vadd.f32 %v936_v16, %v371_v0 }
 0x136   : > { %v455_v17 = vpop.f32.mrf.mxu0  ;;  %v564_v20 = vpop.f32.mrf.mxu1 }
 0x137   : > { %595 = vst [vmem:[%s1468_s28 + $0x10] sm:$0xff] %v454_v15  ;;  %v456_v19 = vadd.f32 %v455_v17, %v1464_v1  ;;  %612 = vst [vmem:[%s1480_s11 + $0x18] sm:$0xff] %v570_v18  ;;  %v565_v22 = vadd.f32 %v564_v20, %v371_v0 }
 0x138   : > { %v459_v21 = vpop.f32.mrf.mxu0  ;;  %v939_v24 = vpop.f32.mrf.mxu1 }
 0x139   : > { %603 = vst [vmem:[%s1473_s30 + $0x10] sm:$0xff] %v456_v19  ;;  %v460_v23 = vadd.f32 %v459_v21, %v1462_v62  ;;  %611 = vst [vmem:[%s1480_s11 + $0x10] sm:$0xff] %v565_v22  ;;  %v580_v26 = vadd.f32 %v939_v24, %v371_v0 }
 0x13a   : > { %v461_v25 = vpop.f32.mrf.mxu0  ;;  %v574_v28 = vpop.f32.mrf.mxu1 }
 0x13b   : > { %596 = vst [vmem:[%s1468_s28 + $0x18] sm:$0xff] %v460_v23  ;;  %v462_v27 = vadd.f32 %v461_v25, %v1464_v1  ;;  %614 = vst [vmem:[%s1480_s11 + $0x28] sm:$0xff] %v580_v26  ;;  %v575_v30 = vadd.f32 %v574_v28, %v371_v0 }
 0x13c   : > { %v465_v29 = vpop.f32.mrf.mxu0  ;;  %v942_v32 = vpop.f32.mrf.mxu1 }
 0x13d   : > { %604 = vst [vmem:[%s1473_s30 + $0x18] sm:$0xff] %v462_v27  ;;  %v466_v31 = vadd.f32 %v465_v29, %v1462_v62  ;;  %613 = vst [vmem:[%s1480_s11 + $0x20] sm:$0xff] %v575_v30  ;;  %v590_v34 = vadd.f32 %v942_v32, %v371_v0 }
 0x13e   : > { %v467_v33 = vpop.f32.mrf.mxu0  ;;  %v584_v36 = vpop.f32.mrf.mxu1 }
 0x13f   : > { %597 = vst [vmem:[%s1468_s28 + $0x20] sm:$0xff] %v466_v31  ;;  %v468_v35 = vadd.f32 %v467_v33, %v1464_v1  ;;  %616 = vst [vmem:[%s1480_s11 + $0x38] sm:$0xff] %v590_v34  ;;  %v585_v38 = vadd.f32 %v584_v36, %v371_v0 }
 0x140   : > { %v471_v37 = vpop.f32.mrf.mxu0 }
 0x141   : > { %605 = vst [vmem:[%s1473_s30 + $0x20] sm:$0xff] %v468_v35  ;;  %v472_v39 = vadd.f32 %v471_v37, %v1462_v62  ;;  %615 = vst [vmem:[%s1480_s11 + $0x30] sm:$0xff] %v585_v38 }
 0x142   : > { %v473_v40 = vpop.f32.mrf.mxu0 }
 0x143   : > { %598 = vst [vmem:[%s1468_s28 + $0x28] sm:$0xff] %v472_v39  ;;  %v474_v41 = vadd.f32 %v473_v40, %v1464_v1 }
 0x144   : > { %v477_v42 = vpop.f32.mrf.mxu0 }
 0x145   : > { %606 = vst [vmem:[%s1473_s30 + $0x28] sm:$0xff] %v474_v41  ;;  %v478_v43 = vadd.f32 %v477_v42, %v1462_v62 }
 0x146   : > { %v479_v44 = vpop.f32.mrf.mxu0 }
 0x147   : > { %599 = vst [vmem:[%s1468_s28 + $0x30] sm:$0xff] %v478_v43  ;;  %v480_v45 = vadd.f32 %v479_v44, %v1464_v1 }
 0x148   : > { %v483_v46 = vpop.f32.mrf.mxu0 }
 0x149   : > { %607 = vst [vmem:[%s1473_s30 + $0x30] sm:$0xff] %v480_v45  ;;  %v484_v47 = vadd.f32 %v483_v46, %v1462_v62 }
 0x14a   : > { %v485_v48 = vpop.f32.mrf.mxu0 }
 0x14b   : > { %600 = vst [vmem:[%s1468_s28 + $0x38] sm:$0xff] %v484_v47  ;;  %v486_v49 = vadd.f32 %v485_v48, %v1464_v1  ;;  %s1107_s28 = sshll.u32 %s1268_s8, 4  ;;  %s1108_s28 = int_to_ptr.vmem [resolvable:$false] %s1107_s28 }
 0x14c   : > { %s1109_s29 = scalar_lea.vmem %s1108_s28, 2048  ;;  %p1110_p0 = scmp.lt.s32.totalorder %s1510_s9, %s1108_s28 }
 0x14d   : > { %p1111_p3 = scmp.lt.s32.totalorder %s1109_s29, %s1103_s6 }
 0x14f   : > { %p1112_p5 = por %p1111_p3, %p1110_p0 }
 0x151   : > { %p1113_p2 = pnand %p1112_p5, %p1106_p8 }
 0x153   : > { %1116 = shalt.err (!%p1113_p2)
}
 0x154   : > { %s1117_s21 = scalar_lea.hbm %s1525_s4, 1024  ;;  %s1121_s5 = scalar_lea.hbm %s1653_s3, 4096 }
 0x155   : > { %p1118_p6 = scmp.ne.s32.totalorder %s1525_s4, %s1117_s21  ;;  %p1122_p11 = scmp.lt.s32.totalorder %s1525_s4, %s1653_s3 }
 0x156   : > { %p1123_p10 = scmp.lt.s32.totalorder %s1121_s5, %s1117_s21 }
 0x157   : > { %p1119_p7 = pnand %p1118_p6, %p1389_p12 }
 0x158   : > { %p1124_p13 = por %p1123_p10, %p1122_p11 }
 0x159   : > { %p1120_p9 = pneg %p1119_p7 }
 0x15b   : > { %p1125_p1 = pnand %p1124_p13, %p1120_p9 }
 0x15d   : > { %1128 = shalt.err (!%p1125_p1)
}
 0x15e   : > { %s1269_s29 = smov 128   ;;  %s1270_s6 = smov 8   ;;  %608 = vst [vmem:[%s1473_s30 + $0x38] sm:$0xff] %v486_v49 }
 0x15f   : > { %949 = dma.vmem_to_hbm [thread:$0]  (%p1389_p12), %s1510_s9, 1024, %s1525_s4, %s618_s15, %s1269_s29, %s1269_s29, %s1270_s6  }
 0x160   : > { %s1680_s28 = sand.u32 1, %s1344_s26   ;;  %s1129_s23 = scalar_lea.vmem %s1514_s27, 1024 }
 0x161   : > { %s1570_s21 = scalar_lea.sflag [#allocation9], %s1680_s28  ;;  %p1130_p4 = scmp.ne.s32.totalorder %s1514_s27, %s1129_s23 }
 0x162   : > { %s1271_s7 = smov [#allocation8]  }
 0x163   : > { %p1131_p8 = pnand %p1130_p4, %p1389_p12  ;;  %s1133_s5 = sshll.u32 %s1271_s7, 4  ;;  %s1134_s5 = int_to_ptr.vmem [resolvable:$false] %s1133_s5 }
 0x164   : > { %s1135_s11 = scalar_lea.vmem %s1134_s5, 2048  ;;  %p1136_p3 = scmp.lt.s32.totalorder %s1514_s27, %s1134_s5 }
 0x165   : > { %p1132_p0 = pneg %p1131_p8  ;;  %p1137_p5 = scmp.lt.s32.totalorder %s1135_s11, %s1129_s23 }
 0x167   : > { %p1138_p2 = por %p1137_p5, %p1136_p3 }
 0x169   : > { %p1139_p6 = pnand %p1138_p2, %p1132_p0 }
 0x16b   : > { %1142 = shalt.err (!%p1139_p6)
}
 0x16c   : > { %s1143_s26 = scalar_lea.hbm %s1534_s1, 1024  ;;  %s1147_s9 = scalar_lea.hbm %s1678_s10, 4096 }
 0x16d   : > { %p1144_p7 = scmp.ne.s32.totalorder %s1534_s1, %s1143_s26  ;;  %p1148_p10 = scmp.lt.s32.totalorder %s1534_s1, %s1678_s10 }
 0x16e   : > { %p1149_p13 = scmp.lt.s32.totalorder %s1147_s9, %s1143_s26 }
 0x16f   : > { %p1145_p9 = pnand %p1144_p7, %p1389_p12 }
 0x170   : > { %p1150_p1 = por %p1149_p13, %p1148_p10 }
 0x171   : > { %p1146_p11 = pneg %p1145_p9 }
 0x173   : > { %p1151_p4 = pnand %p1150_p1, %p1146_p11 }
 0x175   : > { %1154 = shalt.err (!%p1151_p4)
}
 0x176   : > { %950 = dma.vmem_to_hbm [thread:$0]  (%p1389_p12), %s1514_s27, 1024, %s1534_s1, %s1570_s21, %s1269_s29, %s1269_s29, %s1270_s6  }
 0x177   : > { %s1155_s8 = scalar_lea.vmem %s1527_s22, 1024  ;;  %s1272_s28 = smov [#allocation10]  }
 0x178   : > { %p1156_p8 = scmp.ne.s32.totalorder %s1527_s22, %s1155_s8  ;;  %s1159_s23 = sshll.u32 %s1272_s28, 4  ;;  %s1160_s23 = int_to_ptr.vmem [resolvable:$false] %s1159_s23 }
 0x179   : > { %s1161_s7 = scalar_lea.vmem %s1160_s23, 2048  ;;  %p1162_p5 = scmp.lt.s32.totalorder %s1527_s22, %s1160_s23 }
 0x17a   : > { %p1157_p0 = pnand %p1156_p8, %p1389_p12  ;;  %p1163_p2 = scmp.lt.s32.totalorder %s1161_s7, %s1155_s8 }
 0x17c   : > { %p1158_p3 = pneg %p1157_p0  ;;  %p1164_p6 = por %p1163_p2, %p1162_p5 }
 0x17e   : > { %p1165_p7 = pnand %p1164_p6, %p1158_p3 }
 0x180   : > { %1168 = shalt.err (!%p1165_p7)
}
 0x181   : > { %s1169_s5 = scalar_lea.hbm %s1539_s16, 1024  ;;  %s1173_s11 = scalar_lea.hbm %s1679_s12, 4096 }
 0x182   : > { %p1170_p9 = scmp.ne.s32.totalorder %s1539_s16, %s1169_s5  ;;  %p1174_p13 = scmp.lt.s32.totalorder %s1539_s16, %s1679_s12 }
 0x183   : > { %p1175_p1 = scmp.lt.s32.totalorder %s1173_s11, %s1169_s5 }
 0x184   : > { %p1171_p11 = pnand %p1170_p9, %p1389_p12 }
 0x185   : > { %p1176_p4 = por %p1175_p1, %p1174_p13 }
 0x186   : > { %p1172_p10 = pneg %p1171_p11 }
 0x188   : > { %p1177_p8 = pnand %p1176_p4, %p1172_p10 }
 0x18a   : > { %1180 = shalt.err (!%p1177_p8)
}
 0x18b   : > { %951 = dma.vmem_to_hbm [thread:$0]  (%p1389_p12), %s1527_s22, 1024, %s1539_s16, %s1570_s21, %s1269_s29, %s1269_s29, %s1270_s6  }
 0x18c PF: > { %s1681_s30 = sld [smem:[#allocation15_spill]]  ;;  %p976_p0 = scmp.ge.s32.totalorder %s1259_s25, 2 }
 0x18d   : > { %s1682_s9 = sld [smem:[#allocation17_spill]] }
 0x192   : > { %s694_s4 = sand.u32 1, %s1681_s30  }
 0x193   : > { %p1683_p3 = scmp.ne.s32.totalorder %s1682_s9, 0  ;;  %s695_s15 = scalar_lea.sflag [#allocation4], %s694_s4 }
 0x195   : > { %p964_p5 = pnand %p976_p0, %p1683_p3 }
 0x197   : > { %p965_p2 = pneg %p964_p5 }
 0x199   : > { %1222 = dma.done.wait (%p965_p2), %s695_s15, 1024  }
 0x19a   : > { %1224 = vsyncadd (%p965_p2), %s695_s15, 4294966272  ;;  %s1684_s17 = sadd.s32 4294967294, %s1259_s25  }
 0x19b   : > { %s703_s8 = sand.u32 1, %s1684_s17  }
 0x19c   : > { %s704_s28 = scalar_lea.sflag [#allocation9], %s703_s8 }
 0x19d   : > { %1226 = dma.done.wait (%p965_p2), %s704_s28, 2048  }
 0x19e   : > { %1228 = vsyncadd (%p965_p2), %s704_s28, 4294965248  ;;  %s26_s25 = sadd.s32 1, %s1259_s25   ;;  %s1685_s21 = sld [smem:[#allocation16_spill]] }
 0x19f   : > { %p23_p12 = scmp.ge.s32.totalorder %s26_s25, 6   ;;  %s1686_s23 = sld [smem:[#allocation18_spill]] }
 0x1a0   : > { %s1687_s18 = smov %s1235_s19  ;;  %s1688_s19 = smov %s1239_s20 }
 0x1a1   : > { %s1689_s20 = smov %s1406_s13  ;;  %s1690_s22 = smov %s1255_s24 }
 0x1a2   : > { %s1691_s24 = smov %s1697_s14  ;;  %25 = sbr.rel (!%p23_p12) target bundleno = 14 (0xe), region = 113 }
 0x1a7   :  { %718 = vsyncpa [#allocation3], 1 }
 0x1a8   :  { %720 = vsyncpa [#allocation3 + $0x1], 1 }
 0x1a9   :  { %721 = vsyncpa [#allocation6], 1 }
 0x1aa   :  { %722 = vsyncpa [#allocation4], 1 }
 0x1ab   :  { %724 = vsyncpa [#allocation4 + $0x1], 1 }
 0x1ac   :  { %725 = vsyncpa [#allocation9], 1 }
 0x1ad   :  { %727 = vsyncpa [#allocation9 + $0x1], 1 }

</bundles_post_ra>
